<compile_context>
chip_gen: v5e
topology: v5e:2x2
jax: 0.10.0
libtpu: 0.0.40
codegen_flags: <defaults>
</compile_context>

<pallas_src>
import functools

import jax
import jax.numpy as jnp
from jax.experimental import pallas as pl
from jax.experimental.pallas import tpu as pltpu


def _round_up(x, m):
    return ((x + m - 1) // m) * m


def _tensorcores_per_chip():
    # v5e / v6e are single-TensorCore parts; v7x has two TCs per chip.  Only on multi-TC parts
    # is it worth massaging the grid into an even step count for the 'parallel' axis split.
    try:
        kind = jax.devices()[0].device_kind.lower()
    except Exception:
        return 1
    return 2 if "v7" in kind else 1


def mlp_kernel(x_ref, w1_ref, b1_ref, w2_ref, b2_ref, w3_ref, b3_ref, o_ref):
    # x tile arrives in its original dtype (f32) and is cast to the MXU operand dtype here,
    # removing the wrapper-side x.astype() HBM pass.  All matmuls accumulate in f32 on the MXU;
    # the bias-add / ReLU epilogue stays in f32 with a single cast back before the next matmul.
    x = x_ref[...].astype(w1_ref.dtype)

    h = jnp.dot(x, w1_ref[...], preferred_element_type=jnp.float32)
    h = jnp.maximum(h + b1_ref[...], 0.0)                 # bias + ReLU in f32
    h = h.astype(w2_ref.dtype)                            # back to MXU dtype

    h = jnp.dot(h, w2_ref[...], preferred_element_type=jnp.float32)
    h = jnp.maximum(h + b2_ref[...], 0.0)
    h = h.astype(w3_ref.dtype)

    y = jnp.dot(h, w3_ref[...], preferred_element_type=jnp.float32) + b3_ref[...]
    o_ref[...] = y.astype(o_ref.dtype)


@functools.partial(jax.jit, static_argnames=("block_m", "compute_dtype"))
def mlp_forward(x, w1, b1, w2, b2, w3, b3, *, block_m=1024,
                compute_dtype=jnp.bfloat16):
    """Fused 3-layer MLP forward: relu(relu(x@w1+b1)@w2+b2)@w3+b3.

    x: (N, in_feats); w_i pre-transposed to (fan_in, fan_out); b_i: (fan_out,).
    compute_dtype is a deliberate, caller-visible precision choice: bf16 (default) is the MXU
    fast path with f32 accumulation; jnp.float32 reproduces the exact f32 module numerics.
    """
    n, in_feats = x.shape
    hidden = w1.shape[1]
    out_feats = w3.shape[1]

    # Weights/biases are tiny (<70 KiB total); cast them once in the wrapper.  The large
    # activation stream (x) is cast inside the kernel instead (no extra HBM pass).
    w1c = w1.astype(compute_dtype)
    w2c = w2.astype(compute_dtype)
    w3c = w3.astype(compute_dtype)
    b1r = b1.reshape(1, hidden).astype(jnp.float32)
    b2r = b2.reshape(1, hidden).astype(jnp.float32)
    b3r = b3.reshape(1, out_feats).astype(jnp.float32)

    # ---- Batch tiling ----------------------------------------------------------------------
    # block_m ~1024 amortizes the fixed per-grid-step overhead; keep it a multiple of 256.
    assert block_m % 256 == 0, "block_m must be a multiple of 256"
    if n >= block_m:
        block_m_eff = block_m
    else:
        block_m_eff = _round_up(n, 8)        # single (possibly ragged) block, 8-row aligned
    num_blocks = pl.cdiv(n, block_m_eff)

    # v7x only: prefer an even number of grid steps so the 'parallel' axis splits evenly
    # across the two TensorCores.  Achieved by shrinking the block (never by padding the
    # batch), and skipped entirely on single-TC v5e/v6e.
    if _tensorcores_per_chip() >= 2 and num_blocks > 1 and num_blocks % 2 == 1:
        for bm in range(block_m_eff - 256, 255, -256):
            if pl.cdiv(n, bm) % 2 == 0:
                block_m_eff = bm
                num_blocks = pl.cdiv(n, bm)
                break

    # Weights/biases are small and constant across the grid: full-array blocks with a constant
    # index_map keep them VMEM-resident for the whole call.
    full = lambda shape: pl.BlockSpec(shape, lambda i: (0, 0))

    itemsize = jnp.dtype(x.dtype).itemsize
    wsize = jnp.dtype(compute_dtype).itemsize
    cost = pl.CostEstimate(
        flops=2 * n * (in_feats * hidden + hidden * hidden + hidden * out_feats),
        transcendentals=0,
        bytes_accessed=(n * in_feats * itemsize
                        + (in_feats * hidden + hidden * hidden + hidden * out_feats) * wsize
                        + (2 * hidden + out_feats) * 4
                        + n * out_feats * itemsize),
    )

    out = pl.pallas_call(
        mlp_kernel,
        out_shape=jax.ShapeDtypeStruct((n, out_feats), x.dtype),
        grid_spec=pl.GridSpec(
            # Ragged tail blocks are handled by Pallas edge-block masking (partial DMAs),
            # so the wrapper does no jnp.pad of x and no output slice.
            grid=(num_blocks,),
            in_specs=[
                pl.BlockSpec((block_m_eff, in_feats), lambda i: (i, 0)),  # x tile (f32)
                full((in_feats, hidden)),    # w1
                full((1, hidden)),           # b1
                full((hidden, hidden)),      # w2
                full((1, hidden)),           # b2
                full((hidden, out_feats)),   # w3 (no zero-column padding)
                full((1, out_feats)),        # b3
            ],
            # Output stored at its natural (N, out_feats) width: HBM side of each block is
            # contiguous (out_feats*4 B rows back-to-back), ~8x less writeback than the old
            # 16->128 zero-pad; only the VMEM-side store is lane-masked, which is not the
            # bottleneck here.
            # TODO(synk): row-pack 8 logical rows into one 128-lane output row once the
            # (TM,16)->(TM//8,128) in-kernel relayout lowers reliably; it would make the
            # VMEM store lane-dense at identical HBM traffic.
            out_specs=pl.BlockSpec((block_m_eff, out_feats), lambda i: (i, 0)),
        ),
        compiler_params=pltpu.CompilerParams(
            dimension_semantics=("parallel",),
        ),
        cost_estimate=cost,
    )(x, w1c, b1r, w2c, b2r, w3c, b3r)

    return out


def init_linear(key, fan_in, fan_out, dtype=jnp.float32):
    """Deterministic init mimicking PyTorch nn.Linear default (uniform +-1/sqrt(fan_in)).
    Returned weight is already transposed to (fan_in, fan_out) for y = x @ W + b."""
    kw, kb = jax.random.split(key)
    bound = 1.0 / jnp.sqrt(jnp.float32(fan_in))
    w = jax.random.uniform(kw, (fan_in, fan_out), dtype, minval=-bound, maxval=bound)
    b = jax.random.uniform(kb, (fan_out,), dtype, minval=-bound, maxval=bound)
    return w, b


if __name__ == "__main__":
    # Shapes consistent with the module defaults:
    # MLP(in_feats=32, out_feats=16), hidden_dim=128, hidden_layer=3, activation='relu'.
    batch, in_feats, hidden_dim, out_feats = 16, 32, 128, 16

    key = jax.random.PRNGKey(0)
    kx, k1, k2, k3 = jax.random.split(key, 4)

    x = jax.random.normal(kx, (batch, in_feats), jnp.float32)
    w1, b1 = init_linear(k1, in_feats, hidden_dim)
    w2, b2 = init_linear(k2, hidden_dim, hidden_dim)
    w3, b3 = init_linear(k3, hidden_dim, out_feats)

    # Plain-JAX reference (same math as the PyTorch module), full-precision matmuls.
    hp = jax.lax.Precision.HIGHEST
    ref = jnp.maximum(jnp.dot(x, w1, precision=hp) + b1, 0.0)
    ref = jnp.maximum(jnp.dot(ref, w2, precision=hp) + b2, 0.0)
    ref = jnp.dot(ref, w3, precision=hp) + b3

    # 1) f32 compute path: exact module semantics.
    y_f32 = jax.block_until_ready(
        mlp_forward(x, w1, b1, w2, b2, w3, b3, compute_dtype=jnp.float32))
    assert y_f32.shape == (batch, out_feats)
    assert jnp.allclose(y_f32, ref, atol=1e-4, rtol=1e-4), "f32 path mismatch"

    # 2) Default bf16 MXU fast path (deliberate, documented mixed-precision choice).
    y_bf16 = jax.block_until_ready(mlp_forward(x, w1, b1, w2, b2, w3, b3))
    assert y_bf16.shape == (batch, out_feats)
    assert jnp.allclose(y_bf16, ref, atol=5e-2, rtol=5e-2), "bf16 path mismatch"

    print("KERNEL_OK")
</pallas_src>

<mosaic_0001>
module attributes {stable_mosaic.version = 11 : i64} {
  func.func @mlp_kernel(%arg0: i32, %arg1: memref<16x32xf32, #tpu.memory_space<vmem>>, %arg2: memref<32x128xf32, #tpu.memory_space<vmem>>, %arg3: memref<1x128xf32, #tpu.memory_space<vmem>>, %arg4: memref<128x128xf32, #tpu.memory_space<vmem>>, %arg5: memref<1x128xf32, #tpu.memory_space<vmem>>, %arg6: memref<128x16xf32, #tpu.memory_space<vmem>>, %arg7: memref<1x16xf32, #tpu.memory_space<vmem>>, %arg8: memref<16x16xf32, #tpu.memory_space<vmem>>) attributes {dimension_semantics = [#tpu.dimension_semantics<parallel>], iteration_bounds = array<i64: 1>, scalar_prefetch = 0 : i64, scratch_operands = 0 : i64, tpu.core_type = #tpu.core_type<tc>, window_params = [{transform_indices = @transform_0, window_bounds = array<i64: 16, 32>}, {pipeline_mode = #tpu.pipeline_mode<synchronous>, transform_indices = @transform_1, window_bounds = array<i64: 32, 128>}, {pipeline_mode = #tpu.pipeline_mode<synchronous>, transform_indices = @transform_2, window_bounds = array<i64: 1, 128>}, {pipeline_mode = #tpu.pipeline_mode<synchronous>, transform_indices = @transform_3, window_bounds = array<i64: 128, 128>}, {pipeline_mode = #tpu.pipeline_mode<synchronous>, transform_indices = @transform_4, window_bounds = array<i64: 1, 128>}, {pipeline_mode = #tpu.pipeline_mode<synchronous>, transform_indices = @transform_5, window_bounds = array<i64: 128, 16>}, {pipeline_mode = #tpu.pipeline_mode<synchronous>, transform_indices = @transform_6, window_bounds = array<i64: 1, 16>}, {transform_indices = @transform_7, window_bounds = array<i64: 16, 16>}]} {
    %c0 = arith.constant 0 : index
    %c0_0 = arith.constant 0 : index
    %0 = vector.load %arg1[%c0, %c0_0] : memref<16x32xf32, #tpu.memory_space<vmem>>, vector<16x32xf32>
    %c0_1 = arith.constant 0 : index
    %c0_2 = arith.constant 0 : index
    %1 = vector.load %arg2[%c0_1, %c0_2] : memref<32x128xf32, #tpu.memory_space<vmem>>, vector<32x128xf32>
    %cst = arith.constant dense<0.000000e+00> : vector<16x128xf32>
    %2 = tpu.matmul %0, %1, %cst {dimension_numbers = #tpu.dot_dimension_numbers<[1], [0], [0], [1], [0, 0, 1, 1], [], []>} : vector<16x32xf32>, vector<32x128xf32>, vector<16x128xf32> -> vector<16x128xf32>
    %c0_3 = arith.constant 0 : index
    %c0_4 = arith.constant 0 : index
    %3 = vector.load %arg3[%c0_3, %c0_4] : memref<1x128xf32, #tpu.memory_space<vmem>>, vector<1x128xf32>
    %4 = vector.broadcast %3 : vector<1x128xf32> to vector<16x128xf32>
    %5 = arith.addf %2, %4 : vector<16x128xf32>
    %cst_5 = arith.constant 0.000000e+00 : f32
    %6 = vector.broadcast %cst_5 : f32 to vector<16x128xf32>
    %7 = arith.maximumf %5, %6 : vector<16x128xf32>
    %c0_6 = arith.constant 0 : index
    %c0_7 = arith.constant 0 : index
    %8 = vector.load %arg4[%c0_6, %c0_7] : memref<128x128xf32, #tpu.memory_space<vmem>>, vector<128x128xf32>
    %cst_8 = arith.constant dense<0.000000e+00> : vector<16x128xf32>
    %9 = tpu.matmul %7, %8, %cst_8 {dimension_numbers = #tpu.dot_dimension_numbers<[1], [0], [0], [1], [0, 0, 1, 1], [], []>} : vector<16x128xf32>, vector<128x128xf32>, vector<16x128xf32> -> vector<16x128xf32>
    %c0_9 = arith.constant 0 : index
    %c0_10 = arith.constant 0 : index
    %10 = vector.load %arg5[%c0_9, %c0_10] : memref<1x128xf32, #tpu.memory_space<vmem>>, vector<1x128xf32>
    %11 = vector.broadcast %10 : vector<1x128xf32> to vector<16x128xf32>
    %12 = arith.addf %9, %11 : vector<16x128xf32>
    %cst_11 = arith.constant 0.000000e+00 : f32
    %13 = vector.broadcast %cst_11 : f32 to vector<16x128xf32>
    %14 = arith.maximumf %12, %13 : vector<16x128xf32>
    %c0_12 = arith.constant 0 : index
    %c0_13 = arith.constant 0 : index
    %15 = vector.load %arg6[%c0_12, %c0_13] : memref<128x16xf32, #tpu.memory_space<vmem>>, vector<128x16xf32>
    %cst_14 = arith.constant dense<0.000000e+00> : vector<16x16xf32>
    %16 = tpu.matmul %14, %15, %cst_14 {dimension_numbers = #tpu.dot_dimension_numbers<[1], [0], [0], [1], [0, 0, 1, 1], [], []>} : vector<16x128xf32>, vector<128x16xf32>, vector<16x16xf32> -> vector<16x16xf32>
    %c0_15 = arith.constant 0 : index
    %c0_16 = arith.constant 0 : index
    %17 = vector.load %arg7[%c0_15, %c0_16] : memref<1x16xf32, #tpu.memory_space<vmem>>, vector<1x16xf32>
    %18 = vector.broadcast %17 : vector<1x16xf32> to vector<16x16xf32>
    %19 = arith.addf %16, %18 : vector<16x16xf32>
    %c0_17 = arith.constant 0 : index
    %c0_18 = arith.constant 0 : index
    %20 = vector.load %arg8[%c0_17, %c0_18] : memref<16x16xf32, #tpu.memory_space<vmem>>, vector<16x16xf32>
    tpu.vector_store %arg8[%c0_17, %c0_18], %19 {strides = array<i32>} : memref<16x16xf32, #tpu.memory_space<vmem>>, vector<16x16xf32>,
    return
  }
  func.func @transform_0(%arg0: i32) -> (i32, i32) {
    %c0_i32 = arith.constant 0 : i32
    %c0_i32_0 = arith.constant 0 : i32
    return %arg0, %c0_i32 : i32, i32
  }
  func.func @transform_1(%arg0: i32) -> (i32, i32) {
    %c0_i32 = arith.constant 0 : i32
    %c0_i32_0 = arith.constant 0 : i32
    %c0_i32_1 = arith.constant 0 : i32
    return %c0_i32, %c0_i32_0 : i32, i32
  }
  func.func @transform_2(%arg0: i32) -> (i32, i32) {
    %c0_i32 = arith.constant 0 : i32
    %c0_i32_0 = arith.constant 0 : i32
    %c0_i32_1 = arith.constant 0 : i32
    return %c0_i32, %c0_i32_0 : i32, i32
  }
  func.func @transform_3(%arg0: i32) -> (i32, i32) {
    %c0_i32 = arith.constant 0 : i32
    %c0_i32_0 = arith.constant 0 : i32
    %c0_i32_1 = arith.constant 0 : i32
    return %c0_i32, %c0_i32_0 : i32, i32
  }
  func.func @transform_4(%arg0: i32) -> (i32, i32) {
    %c0_i32 = arith.constant 0 : i32
    %c0_i32_0 = arith.constant 0 : i32
    %c0_i32_1 = arith.constant 0 : i32
    return %c0_i32, %c0_i32_0 : i32, i32
  }
  func.func @transform_5(%arg0: i32) -> (i32, i32) {
    %c0_i32 = arith.constant 0 : i32
    %c0_i32_0 = arith.constant 0 : i32
    %c0_i32_1 = arith.constant 0 : i32
    return %c0_i32, %c0_i32_0 : i32, i32
  }
  func.func @transform_6(%arg0: i32) -> (i32, i32) {
    %c0_i32 = arith.constant 0 : i32
    %c0_i32_0 = arith.constant 0 : i32
    %c0_i32_1 = arith.constant 0 : i32
    return %c0_i32, %c0_i32_0 : i32, i32
  }
  func.func @transform_7(%arg0: i32) -> (i32, i32) {
    %c0_i32 = arith.constant 0 : i32
    %c0_i32_0 = arith.constant 0 : i32
    return %arg0, %c0_i32 : i32, i32
  }
}

</mosaic_0001>

<bundles_post_ra>
// kernel: mlp_forward.1
= control target key start
LH: loop header
LB: loop body
LE: loop exit
PB: predicated region body
PF: predicated region fallthrough
CT: control target
= control target key end

     0   :  { %12 = vsyncpa [#allocation3], 0  ;;  %s441_s0 = inlined_call_operand.vmem [shape: f32[16,32], index: 0, kind: input, shape index: {}]   ;;  %s442_s1 = inlined_call_operand.hbm [shape: f32[32,128], index: 1, kind: input, shape index: {}]   ;;  %s443_s2 = inlined_call_operand.vmem [shape: f32[1,128], index: 2, kind: input, shape index: {}]   ;;  %s444_s3 = inlined_call_operand.vmem [shape: f32[128,128], index: 3, kind: input, shape index: {}]   ;;  %s445_s4 = inlined_call_operand.vmem [shape: f32[1,128], index: 4, kind: input, shape index: {}]   ;;  %s446_s5 = inlined_call_operand.vmem [shape: f32[128,16], index: 5, kind: input, shape index: {}]   ;;  %s447_s6 = inlined_call_operand.vmem [shape: f32[1,16], index: 6, kind: input, shape index: {}]   ;;  %s448_s7 = inlined_call_operand.hbm [shape: f32[16,16], index: 7, kind: output, shape index: {}]  }
   0x1   :  { %13 = vsyncpa [#allocation4], 0  ;;  %s20_s26 = sshll.u32 %s442_s1, 4  ;;  %s272_s27 = smov [#allocation2]   ;;  %s21_s26 = int_to_ptr.hbm [resolvable:$true] %s20_s26 }
   0x2   :  { %s22_s28 = sshll.u32 %s272_s27, 4  ;;  %s273_s29 = smov 128   ;;  %s23_s28 = int_to_ptr.vmem [resolvable:$true] %s22_s28 }
   0x3   :  { %s274_s30 = smov 8  }
   0x4   :  { %28 = dma.hbm_to_vmem [thread:$0]  %s21_s26, 512, %s23_s28, [#allocation3], %s273_s29, %s273_s29, %s274_s30  }
   0x5   :  { %268 = dma.done.wait [#allocation3], 512  }
   0x6   :  { %269 = vsyncadd [#allocation3], 4294966784  ;;  %v48_v0 = vld [vmem:[#allocation2 + $0x18] sm:$0xff]  ;;  %v47_v1 = vld [vmem:[#allocation2 + $0x10] sm:$0xff]  ;;  %vm53_vm0 = vcmask 261120   ;;  %vm173_vm1 = vcmask 130048  }
   0x7   :  { %72 = vmatpush.msra.mxu0 %v48_v0  ;;  %v46_v2 = vld [vmem:[#allocation2 + $0x8] sm:$0xff]  ;;  %v100_v3 = vld [vmem:[%s444_s3 + $0x78] sm:$0xff]  ;;  %v99_v4 = vld [vmem:[%s444_s3 + $0x70] sm:$0xff]  ;;  %s182_s11 = sshll.u32 %s448_s7, 4  ;;  %s183_s11 = int_to_ptr.hbm [resolvable:$true] %s182_s11 }
   0x8   :  { %105 = vmatpush.msra.mxu1 %v100_v3  ;;  %v45_v5 = vld [vmem:[#allocation2] sm:$0xff]  ;;  %v98_v6 = vld [vmem:[%s444_s3 + $0x68] sm:$0xff]  ;;  %197 = vmatpush.msra.mxu3 %v100_v3  ;;  %v96_v9 = vld [vmem:[%s444_s3 + $0x58] sm:$0xff] }
   0x9   :  { %73 = vmatpush.msra.mxu0 %v47_v1  ;;  %v43_v7 = vld [vmem:[%s441_s0] sm:$0xff]  ;;  %v95_v10 = vld [vmem:[%s444_s3 + $0x50] sm:$0xff]  ;;  %v94_v11 = vld [vmem:[%s444_s3 + $0x48] sm:$0xff] }
   0xa   :  { %106 = vmatpush.msra.mxu1 %v99_v4  ;;  %v97_v8 = vld [vmem:[%s444_s3 + $0x60] sm:$0xff]  ;;  %198 = vmatpush.msra.mxu3 %v99_v4  ;;  %v44_v12 = vld [vmem:[%s441_s0 + $0x8] sm:$0xff]  ;;  %v92_v14 = vld [vmem:[%s444_s3 + $0x38] sm:$0xff] }
   0xb   :  { %74 = vmatpush.msra.mxu0 %v46_v2  ;;  %v93_v13 = vld [vmem:[%s444_s3 + $0x40] sm:$0xff]  ;;  %v91_v15 = vld [vmem:[%s444_s3 + $0x30] sm:$0xff]  ;;  %v90_v16 = vld [vmem:[%s444_s3 + $0x28] sm:$0xff] }
   0xc   :  { %107 = vmatpush.msra.mxu1 %v98_v6  ;;  %199 = vmatpush.msra.mxu3 %v98_v6  ;;  %v89_v17 = vld [vmem:[%s444_s3 + $0x20] sm:$0xff]  ;;  %v88_v18 = vld [vmem:[%s444_s3 + $0x18] sm:$0xff]  ;;  %v87_v19 = vld [vmem:[%s444_s3 + $0x10] sm:$0xff] }
   0xd   :  { %75 = vmatpush.msra.mxu0 %v45_v5  ;;  %v86_v20 = vld [vmem:[%s444_s3 + $0x8] sm:$0xff]  ;;  %v85_v21 = vld [vmem:[%s444_s3] sm:$0xff]  ;;  %v145_v22 = vld [vmem:[%s446_s5 + $0x78] sm:$0xff] }
   0xe   :  { %195 = vmatmul.msk.f32.vlgmr.msra.gmra.mxu0 %vm53_vm0, %v43_v7  ;;  %108 = vmatpush.msra.mxu1 %v97_v8  ;;  %v144_v23 = vld [vmem:[%s446_s5 + $0x70] sm:$0xff]  ;;  %v143_v24 = vld [vmem:[%s446_s5 + $0x68] sm:$0xff]  ;;  %v142_v25 = vld [vmem:[%s446_s5 + $0x60] sm:$0xff] }
   0xf   :  { %200 = vmatpush.msra.mxu3 %v97_v8  ;;  %150 = vmatpush.msra.mxu2 %v145_v22  ;;  %v141_v26 = vld [vmem:[%s446_s5 + $0x58] sm:$0xff]  ;;  %v140_v27 = vld [vmem:[%s446_s5 + $0x50] sm:$0xff]  ;;  %v139_v28 = vld [vmem:[%s446_s5 + $0x48] sm:$0xff] }
  0x10   :  { %109 = vmatpush.msra.mxu1 %v96_v9  ;;  %v138_v29 = vld [vmem:[%s446_s5 + $0x40] sm:$0xff]  ;;  %v137_v30 = vld [vmem:[%s446_s5 + $0x38] sm:$0xff]  ;;  %v136_v32 = vld [vmem:[%s446_s5 + $0x30] sm:$0xff] }
  0x11   :  { %201 = vmatpush.msra.mxu3 %v96_v9  ;;  %151 = vmatpush.msra.mxu2 %v144_v23  ;;  %v217_v31 = vld [vmem:[%s443_s2] ss:$0 sm:$0xff]  ;;  %v135_v33 = vld [vmem:[%s446_s5 + $0x28] sm:$0xff]  ;;  %v133_v38 = vld [vmem:[%s446_s5 + $0x18] sm:$0xff] }
  0x12   :  { %110 = vmatpush.msra.mxu1 %v95_v10  ;;  %v134_v36 = vld [vmem:[%s446_s5 + $0x20] sm:$0xff]  ;;  %v132_v42 = vld [vmem:[%s446_s5 + $0x10] sm:$0xff]  ;;  %v131_v43 = vld [vmem:[%s446_s5 + $0x8] sm:$0xff] }
  0x13   :  { %202 = vmatpush.msra.mxu3 %v95_v10  ;;  %152 = vmatpush.msra.mxu2 %v143_v24  ;;  %v130_v44 = vld [vmem:[%s446_s5] sm:$0xff]  ;;  %s275_s5 = smov [#allocation5]  }
  0x14   :  { %111 = vmatpush.msra.mxu1 %v94_v11  ;;  %v218_v45 = vld [vmem:[%s445_s4] ss:$0 sm:$0xff]  ;;  %s180_s1 = sshll.u32 %s275_s5, 4  ;;  %s181_s1 = int_to_ptr.vmem [resolvable:$true] %s180_s1 }
  0x15   :  { %203 = vmatpush.msra.mxu3 %v94_v11  ;;  %153 = vmatpush.msra.mxu2 %v142_v25  ;;  %v219_v52 = vld [vmem:[%s447_s6] ss:$0 sm:$0xff] }
  0x16   :  { %196 = vmatmul.msk.f32.gmra.mxu0 %vm53_vm0, %v44_v12  ;;  %112 = vmatpush.msra.mxu1 %v93_v13 }
  0x17   :  { %204 = vmatpush.msra.mxu3 %v93_v13  ;;  %154 = vmatpush.msra.mxu2 %v141_v26 }
  0x18   :  { %113 = vmatpush.msra.mxu1 %v92_v14 }
  0x19   :  { %205 = vmatpush.msra.mxu3 %v92_v14  ;;  %155 = vmatpush.msra.mxu2 %v140_v27 }
  0x1a   :  { %114 = vmatpush.msra.mxu1 %v91_v15 }
  0x1b   :  { %206 = vmatpush.msra.mxu3 %v91_v15  ;;  %156 = vmatpush.msra.mxu2 %v139_v28 }
  0x1c   :  { %115 = vmatpush.msra.mxu1 %v90_v16 }
  0x1d   :  { %207 = vmatpush.msra.mxu3 %v90_v16  ;;  %157 = vmatpush.msra.mxu2 %v138_v29 }
  0x1e   :  { %116 = vmatpush.msra.mxu1 %v89_v17 }
  0x1f   :  { %208 = vmatpush.msra.mxu3 %v89_v17  ;;  %158 = vmatpush.msra.mxu2 %v137_v30 }
  0x20   :  { %117 = vmatpush.msra.mxu1 %v88_v18 }
  0x21   :  { %209 = vmatpush.msra.mxu3 %v88_v18  ;;  %159 = vmatpush.msra.mxu2 %v136_v32 }
  0x22   :  { %118 = vmatpush.msra.mxu1 %v87_v19 }
  0x23   :  { %210 = vmatpush.msra.mxu3 %v87_v19  ;;  %160 = vmatpush.msra.mxu2 %v135_v33 }
  0x24   :  { %119 = vmatpush.msra.mxu1 %v86_v20 }
  0x25   :  { %211 = vmatpush.msra.mxu3 %v86_v20  ;;  %161 = vmatpush.msra.mxu2 %v134_v36 }
  0x26   :  { %120 = vmatpush.msra.mxu1 %v85_v21 }
  0x27   :  { %212 = vmatpush.msra.mxu3 %v85_v21  ;;  %162 = vmatpush.msra.mxu2 %v133_v38 }
  0x29   :  { %163 = vmatpush.msra.mxu2 %v132_v42 }
  0x2b   :  { %164 = vmatpush.msra.mxu2 %v131_v43 }
  0x2d   :  { %165 = vmatpush.msra.mxu2 %v130_v44 }
  0x8b   :  { %v77_v34 = vpop.f32.mrf.mxu0 }
  0x8c   :  { %v78_v35 = vadd.f32 %v217_v31, %v77_v34 }
  0x8e   :  { %v83_v37 = vmax.f32 %v78_v35, 0.0 }
  0x90   :  { %121 = vmatmul.f32.vlgmr.msra.gmra.mxu1 %v83_v37 }
  0x93   :  { %v80_v39 = vpop.f32.mrf.mxu0 }
  0x94   :  { %v81_v40 = vadd.f32 %v217_v31, %v80_v39 }
  0x96   :  { %v84_v41 = vmax.f32 %v81_v40, 0.0 }
  0x98   :  { %124 = vmatmul.f32.vlgmr.msra.gmra.mxu3 %v84_v41 }
 0x10d   :  { %v122_v46 = vpop.f32.mrf.mxu1 }
 0x10e   :  { %v123_v47 = vadd.f32 %v218_v45, %v122_v46 }
 0x110   :  { %v128_v48 = vmax.f32 %v123_v47, 0.0 }
 0x112   :  { %166 = vmatmul.f32.vlgmr.msra.gmra.mxu2 %v128_v48 }
 0x11b   :  { %v125_v49 = vpop.f32.mrf.mxu3 }
 0x11c   :  { %v126_v50 = vadd.f32 %v218_v45, %v125_v49 }
 0x11e   :  { %v129_v51 = vmax.f32 %v126_v50, 0.0 }
 0x120   :  { %169 = vmatmul.f32.gmra.mxu2 %v129_v51 }
 0x195   :  { %v167_v53 = vpop.f32.mrf.mxu2 }
 0x196   :  { %v168_v54 = vadd.f32 %v219_v52, %v167_v53 }
 0x198   :  { %174 = vst.msk [vmem:[#allocation5] sm:$0xff] %vm173_vm1, %v168_v54 }
 0x1a3   :  { %v170_v55 = vpop.f32.mrf.mxu2 }
 0x1a4   :  { %v171_v56 = vadd.f32 %v219_v52, %v170_v55 }
 0x1a6   :  { %175 = vst.msk [vmem:[#allocation5 + $0x8] sm:$0xff] %vm173_vm1, %v171_v56 }
 0x1a7   :  { %188 = dma.vmem_to_hbm [thread:$0]  %s181_s1, 256, %s183_s11, [#allocation4], %s273_s29, %s273_s29, %s274_s30  }
 0x1a8   :  { %270 = dma.done.wait [#allocation4], 256  }
 0x1a9   :  { %271 = vsyncadd [#allocation4], 4294967040 }
 0x1aa   :  { %193 = vsyncpa [#allocation3], 1 }
 0x1ab   :  { %194 = vsyncpa [#allocation4], 1 }

</bundles_post_ra>
